<compile_context>
chip_gen: v7x
topology: tpu7x:2x2x1
jax: 0.10.0
libtpu: 0.0.40
codegen_flags: <defaults>
</compile_context>

<pallas_src>
import jax
import jax.numpy as jnp
from jax.experimental import pallas as pl
from jax.experimental.pallas import tpu as pltpu

IN_FEATURES = 10
OUT_FEATURES = 1
GROUP = 128              # batch rows folded onto the lane axis per reshaped row
_SMALL_BATCH_MAX = 2048  # below this, use the single-block native-layout path
_TM_MAX = 1024           # reshaped rows per grid step (= 128K batch rows, 5 MiB)


def _round_up(a, b):
    return (a + b - 1) // b * b


def _linear_small_kernel(b_ref, x_ref, w_ref, o_ref):
    # b_ref: (1,)      SMEM scalar bias
    # x_ref: (B, IN)   VMEM, native row-major layout (no transpose)
    # w_ref: (1, IN)   VMEM weight row (sublane-broadcast)
    # o_ref: (B, 1)    VMEM
    o_ref[...] = (
        jnp.sum(x_ref[...] * w_ref[...], axis=1, keepdims=True) + b_ref[0]
    )


def _linear_mxu_kernel(b_ref, x_ref, w_ref, o_ref):
    # b_ref: (1,)            SMEM scalar bias
    # x_ref: (TM, 1280)      VMEM; each row packs GROUP batch rows of IN feats
    # w_ref: (1280, GROUP)   VMEM structured weight (same block every step)
    # o_ref: (TM, GROUP)     VMEM, lane-dense unmasked stores
    o_ref[...] = (
        jnp.dot(x_ref[...], w_ref[...], preferred_element_type=jnp.float32)
        + b_ref[0]
    )


def _structured_weight(weight):
    """(1280, 128) f32 matrix with weight[0, j] at [k*IN + j, k], else 0."""
    w_flat = weight.astype(jnp.float32).reshape(IN_FEATURES)
    m = jnp.arange(GROUP * IN_FEATURES)
    col = m // IN_FEATURES     # which packed batch lane this row contributes to
    feat = m % IN_FEATURES
    return jnp.where(
        jnp.arange(GROUP)[None, :] == col[:, None],
        w_flat[feat][:, None],
        jnp.float32(0.0),
    )


def linear_pallas(x, weight, bias):
    """y = x @ weight.T + bias, matching torch.nn.Linear(10, 1) semantics."""
    B, in_f = x.shape
    out_f, in_w = weight.shape
    assert in_f == IN_FEATURES and in_w == IN_FEATURES and out_f == OUT_FEATURES

    x = x.astype(jnp.float32)
    b_smem = bias.astype(jnp.float32).reshape(1)

    if B < _SMALL_BATCH_MAX:
        # Tiny/moderate batch: one full-array block, native (B, IN) layout,
        # no grid, no wrapper-side layout ops at all (latency dominated by
        # dispatch, so masked (B, 1) stores are irrelevant here).
        w_row = weight.astype(jnp.float32).reshape(1, IN_FEATURES)
        return pl.pallas_call(
            _linear_small_kernel,
            out_shape=jax.ShapeDtypeStruct((B, OUT_FEATURES), jnp.float32),
            in_specs=[
                pl.BlockSpec(memory_space=pltpu.MemorySpace.SMEM),   # bias
                pl.BlockSpec(memory_space=pltpu.MemorySpace.VMEM),   # x
                pl.BlockSpec(memory_space=pltpu.MemorySpace.VMEM),   # weight row
            ],
            out_specs=pl.BlockSpec(memory_space=pltpu.MemorySpace.VMEM),
        )(b_smem, x, w_row)

    # ---- Gridded MXU path (large batch) ----
    b_pad = _round_up(B, GROUP)
    if b_pad != B:
        # One extra HBM pass only for batches not a multiple of 128.
        x = jnp.pad(x, ((0, b_pad - B), (0, 0)))
    m_rows = b_pad // GROUP
    x_resh = x.reshape(m_rows, GROUP * IN_FEATURES)   # free reshape, no copy

    w_big = _structured_weight(weight)

    # Tile picker: multi-MiB steps, and >= 2 grid steps whenever possible so
    # v7x's two TensorCores both get work (no-op on v5e/v6e).
    tm = min(_TM_MAX, _round_up(pl.cdiv(m_rows, 2), 8))
    grid = (pl.cdiv(m_rows, tm),)

    out = pl.pallas_call(
        _linear_mxu_kernel,
        out_shape=jax.ShapeDtypeStruct((m_rows, GROUP), jnp.float32),
        grid=grid,
        in_specs=[
            pl.BlockSpec(memory_space=pltpu.MemorySpace.SMEM),            # bias
            pl.BlockSpec((tm, GROUP * IN_FEATURES), lambda i: (i, 0)),    # x tile
            pl.BlockSpec((GROUP * IN_FEATURES, GROUP), lambda i: (0, 0)),  # weight
        ],
        out_specs=pl.BlockSpec((tm, GROUP), lambda i: (i, 0)),
        compiler_params=pltpu.CompilerParams(
            dimension_semantics=("parallel",)),
    )(b_smem, x_resh, w_big)

    y = out.reshape(b_pad, OUT_FEATURES)              # free reshape
    return y[:B] if b_pad != B else y


if __name__ == "__main__":
    key = jax.random.PRNGKey(0)
    k_x, k_x2, k_w, k_b = jax.random.split(key, 4)

    # Deterministic parameter init (uniform in +/- 1/sqrt(IN), like nn.Linear).
    bound = 1.0 / jnp.sqrt(jnp.float32(IN_FEATURES))
    weight = jax.random.uniform(
        k_w, (OUT_FEATURES, IN_FEATURES), jnp.float32, -bound, bound)
    bias = jax.random.uniform(k_b, (OUT_FEATURES,), jnp.float32, -bound, bound)

    # Tiny batch -> single-block native-layout path.
    B_small = 8
    x_small = jax.random.normal(k_x, (B_small, IN_FEATURES), jnp.float32)
    y_small = linear_pallas(x_small, weight, bias)
    jax.block_until_ready(y_small)
    ref_small = x_small @ weight.T + bias
    assert y_small.shape == (B_small, OUT_FEATURES)
    assert jnp.allclose(y_small, ref_small, atol=1e-5, rtol=1e-5)

    # Larger batch (not a multiple of 128) -> gridded MXU path exercising the
    # wrapper pad, the structured-weight matmul and a partial final block.
    B_big = 2104
    x_big = jax.random.normal(k_x2, (B_big, IN_FEATURES), jnp.float32)
    y_big = linear_pallas(x_big, weight, bias)
    jax.block_until_ready(y_big)
    ref_big = x_big @ weight.T + bias
    assert y_big.shape == (B_big, OUT_FEATURES)
    # Loose tolerance: f32 matmuls may take bf16 MXU passes under default
    # matmul precision; this check guards layout/indexing, not ULPs.
    assert jnp.allclose(y_big, ref_big, atol=2e-2, rtol=2e-2)

    print("KERNEL_OK")
</pallas_src>

<mosaic_0001>
module attributes {stable_mosaic.version = 11 : i64} {
  func.func @_linear_small_kernel(%arg0: memref<1xf32, #tpu.memory_space<smem>>, %arg1: memref<8x10xf32, #tpu.memory_space<vmem>>, %arg2: memref<1x10xf32, #tpu.memory_space<vmem>>, %arg3: memref<8x1xf32, #tpu.memory_space<vmem>>) attributes {dimension_semantics = [], scalar_prefetch = 0 : i64, scratch_operands = 0 : i64, tpu.core_type = #tpu.core_type<tc>} {
    %c0 = arith.constant 0 : index
    %c0_0 = arith.constant 0 : index
    %0 = vector.load %arg1[%c0, %c0_0] : memref<8x10xf32, #tpu.memory_space<vmem>>, vector<8x10xf32>
    %c0_1 = arith.constant 0 : index
    %c0_2 = arith.constant 0 : index
    %1 = vector.load %arg2[%c0_1, %c0_2] : memref<1x10xf32, #tpu.memory_space<vmem>>, vector<1x10xf32>
    %2 = vector.broadcast %1 : vector<1x10xf32> to vector<8x10xf32>
    %3 = arith.mulf %0, %2 : vector<8x10xf32>
    %cst = arith.constant dense<0.000000e+00> : vector<8xf32>
    %4 = vector.multi_reduction <add>, %3, %cst [1] : vector<8x10xf32> to vector<8xf32>
    %5 = vector.shape_cast %4 : vector<8xf32> to vector<8x1xf32>
    %c0_3 = arith.constant 0 : index
    %6 = memref.load %arg0[%c0_3] : memref<1xf32, #tpu.memory_space<smem>>
    %7 = vector.broadcast %6 : f32 to vector<8x1xf32>
    %8 = arith.addf %5, %7 : vector<8x1xf32>
    %c0_4 = arith.constant 0 : index
    %c0_5 = arith.constant 0 : index
    %9 = vector.load %arg3[%c0_4, %c0_5] : memref<8x1xf32, #tpu.memory_space<vmem>>, vector<8x1xf32>
    tpu.vector_store %arg3[%c0_4, %c0_5], %8 {strides = array<i32>} : memref<8x1xf32, #tpu.memory_space<vmem>>, vector<8x1xf32>,
    return
  }
}

</mosaic_0001>

<bundles_post_ra>
// kernel: tpu_custom_call.1
= control target key start
LH: loop header
LB: loop body
LE: loop exit
PB: predicated region body
PF: predicated region fallthrough
CT: control target
= control target key end

     0   :  { %9 = vsyncpa [#allocation4], 0  ;;  %s76_s12 = smov [#allocation3]   ;;  %s118_s0 = inlined_call_operand.<no memory space> [shape: f32[1], index: 0, kind: input, shape index: {}]   ;;  %s119_s1 = inlined_call_operand.hbm [shape: f32[8,10], index: 1, kind: input, shape index: {}]   ;;  %s120_s2 = inlined_call_operand.vmem [shape: f32[1,10], index: 2, kind: input, shape index: {}]   ;;  %s121_s3 = inlined_call_operand.vmem [shape: f32[8,1], index: 3, kind: output, shape index: {}]  }
   0x1   :  { %s18_s13 = sshll.u32 %s76_s12, 4  ;;  %s52_s16 = scalar_lea.hbm %s119_s1, 128  ;;  %s19_s13 = int_to_ptr.vmem [resolvable:$true] %s18_s13 }
   0x2   :  { %p53_p0 = scmp.ne.s32.totalorder %s119_s1, %s52_s16  ;;  %p56_p1 = scmp.lt.u32.totalorder %s52_s16, %s119_s1 }
   0x4   :  { %p58_p2 = pnand %p56_p1, %p53_p0 }
   0x6   :  { %61 = shalt.err (!%p58_p2)
}
   0x7   :  { %s62_s21 = scalar_lea.vmem %s19_s13, 128  ;;  %p67_p4 = scmp.lt.s32.totalorder %s19_s13, %s19_s13 }
   0x8   :  { %p63_p3 = scmp.ne.s32.totalorder %s19_s13, %s62_s21  ;;  %p68_p5 = scmp.lt.s32.totalorder %s62_s21, %s62_s21 }
   0xa   :  { %p69_p6 = por %p68_p5, %p67_p4 }
   0xc   :  { %p70_p7 = pnand %p69_p6, %p63_p3 }
   0xe   :  { %73 = shalt.err (!%p70_p7)
}
   0xf   :  { %21 = dma.hbm_to_vmem [thread:$0]  %s119_s1, 128, %s19_s13, [#allocation4]  }
  0x10   :  { %74 = dma.done.wait [#allocation4], 128  }
  0x11   :  { %75 = vsyncadd [#allocation4], 4294967168  ;;  %v27_v0 = vld [vmem:[#allocation3] sm:$0xff]  ;;  %vm36_vm0 = vcmask 80896   ;;  %v41_v4 = vstv %s118_s0  ;;  %vm43_vm1 = vcmask 7168  }
  0x12   :  { %v50_v1 = vld [vmem:[%s120_s2] ss:$0 sm:$0xff] }
  0x13   :  { %v35_v2 = vmul.f32 %v50_v1, %v27_v0 }
  0x15   :  { %v37_v3 = vsel %vm36_vm0, %v35_v2, 0.0 }
  0x16   :  { %38 = vadd.xlane.f32.xlu0 %v37_v3 }
  0xa3   :  { %v39_v5 = vpop.xlane.xlu0 %38 }
  0xa4   :  { %v42_v6 = vadd.f32 %v41_v4, %v39_v5 }
  0xa6   :  { %44 = vst.msk [vmem:[%s121_s3] sm:$0xff] %vm43_vm1, %v42_v6 }
  0xa7   :  { %49 = vsyncpa [#allocation4], 1 }

</bundles_post_ra>
